<compile_context>
chip_gen: v6e
topology: v6e:2x2x1
jax: 0.10.0
libtpu: 0.0.40
codegen_flags: <defaults>
</compile_context>

<pallas_src>
import jax
import jax.numpy as jnp
from jax.experimental import pallas as pl
from jax.experimental.pallas import tpu as pltpu

_COS_EPS = 1e-8   # F.cosine_similarity default eps
_PD_EPS = 1e-6    # F.pairwise_distance default eps


def _comp_loss_kernel(wg_ref, ref_ref, tgt_ref, out_ref):
    wg = wg_ref[...].astype(jnp.float32)
    rf = ref_ref[...].astype(jnp.float32)
    tg = tgt_ref[...].astype(jnp.float32)

    tr = tg - rf

    # --- cosine term: 1 - cos(wg, tr) over feature dim (dot-then-divide) ---
    dot = jnp.sum(wg * tr, axis=-1, keepdims=True)
    wg_norm = jnp.maximum(
        jnp.sqrt(jnp.sum(wg * wg, axis=-1, keepdims=True)), _COS_EPS)
    tr_norm = jnp.maximum(
        jnp.sqrt(jnp.sum(tr * tr, axis=-1, keepdims=True)), _COS_EPS)
    # Per-row (block_n, 1) division only -- cheap compared to full-width ops.
    cos = dot / (wg_norm * tr_norm)
    output_loss = 1.0 - cos

    # --- pairwise distance: ||(ref + wg) - tgt + eps||_2 == ||wg - tr + eps|| ---
    diff = wg - tr + _PD_EPS
    pred_loss = jnp.sqrt(jnp.sum(diff * diff, axis=-1, keepdims=True))

    out_ref[...] = output_loss + pred_loss


def _choose_block_n(N, D, vmem_input_budget=24 << 20, max_block=2048):
    """Largest row-block that keeps double-buffered tiles within budget."""
    d_vmem = ((D + 127) // 128) * 128              # lane padding in VMEM
    per_row = 3 * 2 * d_vmem * 4 + 2 * 128 * 4     # 3 inputs + output, 2 buffers
    bn = max(8, min(max_block, vmem_input_budget // per_row))
    bn = (bn // 8) * 8
    n_pad8 = ((N + 7) // 8) * 8
    bn = min(bn, n_pad8)
    # Keep >= 2 grid steps when N allows, so v7x's 2 TCs both get work.
    if n_pad8 > 8 and bn >= n_pad8:
        bn = max(8, (((n_pad8 // 2) + 7) // 8) * 8)
    return bn


def comp_loss(wg, ref, tgt, *, block_n=None):
    """Pallas TPU implementation of CompLoss.forward. Returns shape (N,)."""
    assert wg.shape == ref.shape == tgt.shape and wg.ndim == 2
    N, D = wg.shape

    if block_n is None:
        block_n = _choose_block_n(N, D)

    n_pad = pl.cdiv(N, block_n) * block_n
    if n_pad != N:
        pad = ((0, n_pad - N), (0, 0))
        wg = jnp.pad(wg, pad)
        ref = jnp.pad(ref, pad)
        tgt = jnp.pad(tgt, pad)

    grid = (n_pad // block_n,)
    in_spec = pl.BlockSpec((block_n, D), lambda i: (i, 0))
    out_spec = pl.BlockSpec((block_n, 1), lambda i: (i, 0))

    itemsize = jnp.dtype(wg.dtype).itemsize
    cost = pl.CostEstimate(
        flops=10 * n_pad * D,
        transcendentals=3 * n_pad,
        bytes_accessed=3 * n_pad * D * itemsize + 4 * n_pad,
    )

    out = pl.pallas_call(
        _comp_loss_kernel,
        out_shape=jax.ShapeDtypeStruct((n_pad, 1), jnp.float32),
        grid_spec=pltpu.PrefetchScalarGridSpec(
            num_scalar_prefetch=0,
            grid=grid,
            in_specs=[in_spec, in_spec, in_spec],
            out_specs=out_spec,
        ),
        compiler_params=pltpu.CompilerParams(
            dimension_semantics=("parallel",),
            vmem_limit_bytes=48 << 20,
        ),
        cost_estimate=cost,
    )(wg, ref, tgt)
    return out[:N, 0]


def _comp_loss_ref(wg, ref, tgt):
    # Pure-JAX reference mirroring the PyTorch semantics.
    tr = tgt - ref
    wg_n = jnp.maximum(jnp.linalg.norm(wg, axis=-1), _COS_EPS)
    tr_n = jnp.maximum(jnp.linalg.norm(tr, axis=-1), _COS_EPS)
    cos = jnp.sum(wg * tr, axis=-1) / (wg_n * tr_n)
    output_loss = 1.0 - cos
    diff = (ref + wg) - tgt + _PD_EPS
    pred_loss = jnp.sqrt(jnp.sum(diff * diff, axis=-1))
    return output_loss + pred_loss


if __name__ == "__main__":
    key = jax.random.PRNGKey(0)

    # Case 1: tiny shape consistent with the module (batch=8, hidden=32).
    k1, k2, k3, k4, k5, k6 = jax.random.split(key, 6)
    N, D = 8, 32
    wg = jax.random.normal(k1, (N, D), dtype=jnp.float32)
    ref = jax.random.normal(k2, (N, D), dtype=jnp.float32)
    tgt = jax.random.normal(k3, (N, D), dtype=jnp.float32)
    out = comp_loss(wg, ref, tgt)
    jax.block_until_ready(out)
    expected = _comp_loss_ref(wg, ref, tgt)
    assert out.shape == (N,)
    assert jnp.allclose(out, expected, rtol=1e-5, atol=1e-5)

    # Case 2: N not a multiple of the block (exercises cdiv + padded tail).
    N2, D2 = 137, 256
    wg2 = jax.random.normal(k4, (N2, D2), dtype=jnp.float32)
    ref2 = jax.random.normal(k5, (N2, D2), dtype=jnp.float32)
    tgt2 = jax.random.normal(k6, (N2, D2), dtype=jnp.float32)
    out2 = comp_loss(wg2, ref2, tgt2)
    jax.block_until_ready(out2)
    expected2 = _comp_loss_ref(wg2, ref2, tgt2)
    assert out2.shape == (N2,)
    assert jnp.allclose(out2, expected2, rtol=1e-5, atol=1e-5)

    print("KERNEL_OK")
</pallas_src>

<mosaic_0001>
module attributes {stable_mosaic.version = 11 : i64} {
  func.func @_comp_loss_kernel(%arg0: i32, %arg1: memref<8x32xf32, #tpu.memory_space<vmem>>, %arg2: memref<8x32xf32, #tpu.memory_space<vmem>>, %arg3: memref<8x32xf32, #tpu.memory_space<vmem>>, %arg4: memref<8x1xf32, #tpu.memory_space<vmem>>) attributes {dimension_semantics = [#tpu.dimension_semantics<parallel>], iteration_bounds = array<i64: 1>, scalar_prefetch = 0 : i64, scratch_operands = 0 : i64, tpu.core_type = #tpu.core_type<tc>, window_params = [{transform_indices = @transform_0, window_bounds = array<i64: 8, 32>}, {transform_indices = @transform_1, window_bounds = array<i64: 8, 32>}, {transform_indices = @transform_2, window_bounds = array<i64: 8, 32>}, {transform_indices = @transform_3, window_bounds = array<i64: 8, 1>}]} {
    %c0 = arith.constant 0 : index
    %c0_0 = arith.constant 0 : index
    %0 = vector.load %arg1[%c0, %c0_0] : memref<8x32xf32, #tpu.memory_space<vmem>>, vector<8x32xf32>
    %c0_1 = arith.constant 0 : index
    %c0_2 = arith.constant 0 : index
    %1 = vector.load %arg2[%c0_1, %c0_2] : memref<8x32xf32, #tpu.memory_space<vmem>>, vector<8x32xf32>
    %c0_3 = arith.constant 0 : index
    %c0_4 = arith.constant 0 : index
    %2 = vector.load %arg3[%c0_3, %c0_4] : memref<8x32xf32, #tpu.memory_space<vmem>>, vector<8x32xf32>
    %3 = arith.subf %2, %1 : vector<8x32xf32>
    %4 = arith.mulf %0, %3 : vector<8x32xf32>
    %cst = arith.constant dense<0.000000e+00> : vector<8xf32>
    %5 = vector.multi_reduction <add>, %4, %cst [1] : vector<8x32xf32> to vector<8xf32>
    %6 = vector.shape_cast %5 : vector<8xf32> to vector<8x1xf32>
    %7 = arith.mulf %0, %0 : vector<8x32xf32>
    %cst_5 = arith.constant dense<0.000000e+00> : vector<8xf32>
    %8 = vector.multi_reduction <add>, %7, %cst_5 [1] : vector<8x32xf32> to vector<8xf32>
    %9 = vector.shape_cast %8 : vector<8xf32> to vector<8x1xf32>
    %10 = math.sqrt %9 : vector<8x1xf32>
    %cst_6 = arith.constant 9.99999993E-9 : f32
    %11 = vector.broadcast %cst_6 : f32 to vector<8x1xf32>
    %12 = arith.maximumf %10, %11 : vector<8x1xf32>
    %13 = arith.mulf %3, %3 : vector<8x32xf32>
    %cst_7 = arith.constant dense<0.000000e+00> : vector<8xf32>
    %14 = vector.multi_reduction <add>, %13, %cst_7 [1] : vector<8x32xf32> to vector<8xf32>
    %15 = vector.shape_cast %14 : vector<8xf32> to vector<8x1xf32>
    %16 = math.sqrt %15 : vector<8x1xf32>
    %cst_8 = arith.constant 9.99999993E-9 : f32
    %17 = vector.broadcast %cst_8 : f32 to vector<8x1xf32>
    %18 = arith.maximumf %16, %17 : vector<8x1xf32>
    %19 = arith.mulf %12, %18 : vector<8x1xf32>
    %20 = arith.divf %6, %19 : vector<8x1xf32>
    %cst_9 = arith.constant 1.000000e+00 : f32
    %21 = vector.broadcast %cst_9 : f32 to vector<8x1xf32>
    %22 = arith.subf %21, %20 : vector<8x1xf32>
    %23 = arith.subf %0, %3 : vector<8x32xf32>
    %cst_10 = arith.constant 9.99999997E-7 : f32
    %24 = vector.broadcast %cst_10 : f32 to vector<8x32xf32>
    %25 = arith.addf %23, %24 : vector<8x32xf32>
    %26 = arith.mulf %25, %25 : vector<8x32xf32>
    %cst_11 = arith.constant dense<0.000000e+00> : vector<8xf32>
    %27 = vector.multi_reduction <add>, %26, %cst_11 [1] : vector<8x32xf32> to vector<8xf32>
    %28 = vector.shape_cast %27 : vector<8xf32> to vector<8x1xf32>
    %29 = math.sqrt %28 : vector<8x1xf32>
    %30 = arith.addf %22, %29 : vector<8x1xf32>
    %c0_12 = arith.constant 0 : index
    %c0_13 = arith.constant 0 : index
    %31 = vector.load %arg4[%c0_12, %c0_13] : memref<8x1xf32, #tpu.memory_space<vmem>>, vector<8x1xf32>
    tpu.vector_store %arg4[%c0_12, %c0_13], %30 {strides = array<i32>} : memref<8x1xf32, #tpu.memory_space<vmem>>, vector<8x1xf32>,
    return
  }
  func.func @transform_0(%arg0: i32) -> (i32, i32) {
    %c0_i32 = arith.constant 0 : i32
    %c0_i32_0 = arith.constant 0 : i32
    return %arg0, %c0_i32 : i32, i32
  }
  func.func @transform_1(%arg0: i32) -> (i32, i32) {
    %c0_i32 = arith.constant 0 : i32
    %c0_i32_0 = arith.constant 0 : i32
    return %arg0, %c0_i32 : i32, i32
  }
  func.func @transform_2(%arg0: i32) -> (i32, i32) {
    %c0_i32 = arith.constant 0 : i32
    %c0_i32_0 = arith.constant 0 : i32
    return %arg0, %c0_i32 : i32, i32
  }
  func.func @transform_3(%arg0: i32) -> (i32, i32) {
    %c0_i32 = arith.constant 0 : i32
    %c0_i32_0 = arith.constant 0 : i32
    return %arg0, %c0_i32 : i32, i32
  }
}

</mosaic_0001>

<bundles_post_ra>
// kernel: tpu_custom_call.1
= control target key start
LH: loop header
LB: loop body
LE: loop exit
PB: predicated region body
PF: predicated region fallthrough
CT: control target
= control target key end

     0   :  { %8 = vsyncpa [#allocation3], 0  ;;  %s222_s0 = inlined_call_operand.hbm [shape: f32[8,32], index: 0, kind: input, shape index: {}]   ;;  %s223_s1 = inlined_call_operand.hbm [shape: f32[8,32], index: 1, kind: input, shape index: {}]   ;;  %s224_s2 = inlined_call_operand.hbm [shape: f32[8,32], index: 2, kind: input, shape index: {}]   ;;  %s225_s3 = inlined_call_operand.vmem [shape: f32[8,1], index: 3, kind: output, shape index: {}]  }
   0x1   :  { %9 = vsyncpa [#allocation5], 0  ;;  %s183_s12 = smov [#allocation4]   ;;  %s184_s14 = smov [#allocation2]  }
   0x2   :  { %s26_s13 = sshll.u32 %s183_s12, 4  ;;  %s16_s15 = sshll.u32 %s184_s14, 4  ;;  %s27_s13 = int_to_ptr.vmem [resolvable:$true] %s26_s13  ;;  %s17_s15 = int_to_ptr.vmem [resolvable:$true] %s16_s15 }
   0x3   :  { %s127_s16 = scalar_lea.vmem %s27_s13, 128  ;;  %p132_p1 = scmp.lt.s32.totalorder %s27_s13, %s27_s13 }
   0x4   :  { %p128_p0 = scmp.ne.s32.totalorder %s27_s13, %s127_s16  ;;  %p133_p2 = scmp.lt.s32.totalorder %s127_s16, %s127_s16 }
   0x6   :  { %p134_p3 = por %p133_p2, %p132_p1 }
   0x8   :  { %p135_p4 = pnand %p134_p3, %p128_p0 }
   0xa   :  { %138 = shalt.err (!%p135_p4)
}
   0xb   :  { %29 = dma.hbm_to_vmem [thread:$0]  %s223_s1, 128, %s27_s13, [#allocation5]  }
   0xc   :  { %s147_s19 = scalar_lea.vmem %s17_s15, 128  ;;  %p152_p6 = scmp.lt.s32.totalorder %s17_s15, %s17_s15 }
   0xd   :  { %p148_p5 = scmp.ne.s32.totalorder %s17_s15, %s147_s19  ;;  %p153_p7 = scmp.lt.s32.totalorder %s147_s19, %s147_s19 }
   0xf   :  { %p154_p8 = por %p153_p7, %p152_p6 }
  0x11   :  { %p155_p9 = pnand %p154_p8, %p148_p5 }
  0x13   :  { %158 = shalt.err (!%p155_p9)
}
  0x14   :  { %19 = dma.hbm_to_vmem [thread:$0]  %s222_s0, 128, %s17_s15, [#allocation3]  }
  0x15   :  { %s185_s22 = smov [#allocation6]  }
  0x16   :  { %s36_s23 = sshll.u32 %s185_s22, 4  ;;  %s37_s23 = int_to_ptr.vmem [resolvable:$true] %s36_s23 }
  0x17   :  { %s167_s24 = scalar_lea.vmem %s37_s23, 128  ;;  %p172_p11 = scmp.lt.s32.totalorder %s37_s23, %s37_s23 }
  0x18   :  { %p168_p10 = scmp.ne.s32.totalorder %s37_s23, %s167_s24  ;;  %p173_p12 = scmp.lt.s32.totalorder %s167_s24, %s167_s24 }
  0x1a   :  { %p174_p13 = por %p173_p12, %p172_p11 }
  0x1c   :  { %p175_p0 = pnand %p174_p13, %p168_p10 }
  0x1e   :  { %178 = shalt.err (!%p175_p0)
}
  0x1f   :  { %39 = dma.hbm_to_vmem [thread:$0]  %s224_s2, 128, %s37_s23, [#allocation5]  }
  0x20   :  { %179 = dma.done.wait [#allocation3], 128  }
  0x21   :  { %180 = vsyncadd [#allocation3], 4294967168 }
  0x22   :  { %181 = dma.done.wait [#allocation5], 256  }
  0x23   :  { %182 = vsyncadd [#allocation5], 4294967040  ;;  %v49_v0 = vld [vmem:[#allocation2] sm:$0xff]  ;;  %vm54_vm0 = vcmask 261120   ;;  %v50_v1 = vld [vmem:[#allocation4] sm:$0xff]  ;;  %vm100_vm7 = vcmask 7168  }
  0x24   :  { %v51_v2 = vld [vmem:[#allocation6] sm:$0xff]  ;;  %v58_v3 = vmul.f32 %v49_v0, %v49_v0 }
  0x25   :  { %v52_v4 = vsub.f32 %v51_v2, %v50_v1 }
  0x26   :  { %v59_v5 = vsel %vm54_vm0, %v58_v3, 0.0 }
  0x27   :  { %v70_v6 = vmul.f32 %v52_v4, %v52_v4  ;;  %v86_v7 = vsub.f32 %v49_v0, %v52_v4  ;;  %60 = vadd.xlane.f32.xlu0 %v59_v5  ;;  %v53_v11 = vmul.f32 %v52_v4, %v49_v0 }
  0x29   :  { %v71_v8 = vsel %vm54_vm0, %v70_v6, 0.0  ;;  %v87_v9 = vadd.f32 1e-06, %v86_v7  ;;  %v55_v13 = vsel %vm54_vm0, %v53_v11, 0.0 }
  0x2b   :  { %v88_v10 = vmul.f32 %v87_v9, %v87_v9  ;;  %72 = vadd.xlane.f32.xlu0 %v71_v8 }
  0x2d   :  { %v89_v12 = vsel %vm54_vm0, %v88_v10, 0.0 }
  0x2e   :  { %90 = vadd.xlane.f32.xlu1 %v89_v12 }
  0x32   :  { %56 = vadd.xlane.f32.xlu1 %v55_v13 }
  0xb0   :  { %v61_v14 = vpop.xlane.xlu0 %60 }
  0xb1   :  { %111 = vrsqrt.f32 %v61_v14  ;;  %vm64_vm1 = vcmp.eq.f32.partialorder %v61_v14, inf  ;;  %v67_v20 = vand.u32 2147483648, %v61_v14  ;;  %vm66_vm2 = vcmp.eq.f32.partialorder %v61_v14, 0.0 }
  0xb4   :  { %v73_v15 = vpop.xlane.xlu0 %72 }
  0xb5   :  { %113 = vrsqrt.f32 %v73_v15  ;;  %vm76_vm3 = vcmp.eq.f32.partialorder %v73_v15, inf  ;;  %v79_v24 = vand.u32 2147483648, %v73_v15  ;;  %vm78_vm4 = vcmp.eq.f32.partialorder %v73_v15, 0.0 }
  0xb7   :  { %v91_v21 = vpop.xlane.xlu1 %90 }
  0xb8   :  { %115 = vrsqrt.f32 %v91_v21  ;;  %vm94_vm5 = vcmp.eq.f32.partialorder %v91_v21, inf  ;;  %v97_v34 = vand.u32 2147483648, %v91_v21  ;;  %vm96_vm6 = vcmp.eq.f32.partialorder %v91_v21, 0.0 }
  0xbb   :  { %v57_v32 = vpop.xlane.xlu1 %56 }
  0xbe   :  { %v112_v16 = vpop.eup %111 }
  0xbf   :  { %v63_v17 = vmul.f32 %v112_v16, %v61_v14 }
  0xc1   :  { %v65_v18 = vsel %vm64_vm1, %v61_v14, %v63_v17 }
  0xc2   :  { %v114_v19 = vpop.eup %113  ;;  %v68_v23 = vsel %vm66_vm2, %v67_v20, %v65_v18 }
  0xc3   :  { %v75_v22 = vmul.f32 %v114_v19, %v73_v15  ;;  %v69_v27 = vmax.f32 %v68_v23, 1e-08 }
  0xc5   :  { %v77_v25 = vsel %vm76_vm3, %v73_v15, %v75_v22  ;;  %v116_v30 = vpop.eup %115 }
  0xc6   :  { %v80_v26 = vsel %vm78_vm4, %v79_v24, %v77_v25  ;;  %v93_v31 = vmul.f32 %v116_v30, %v91_v21 }
  0xc7   :  { %v81_v28 = vmax.f32 %v80_v26, 1e-08 }
  0xc8   :  { %v95_v35 = vsel %vm94_vm5, %v91_v21, %v93_v31 }
  0xc9   :  { %v82_v29 = vmul.f32 %v81_v28, %v69_v27  ;;  %v98_v38 = vsel %vm96_vm6, %v97_v34, %v95_v35 }
  0xcb   :  { %117 = vrcp.f32 %v82_v29 }
  0xd8   :  { %v118_v33 = vpop.eup %117 }
  0xd9   :  { %v84_v36 = vmul.f32 %v118_v33, %v57_v32 }
  0xdb   :  { %v85_v37 = vsub.f32 1.0, %v84_v36 }
  0xdd   :  { %v99_v39 = vadd.f32 %v98_v38, %v85_v37 }
  0xdf   :  { %101 = vst.msk [vmem:[%s225_s3] sm:$0xff] %vm100_vm7, %v99_v39 }
  0xe0   :  { %106 = vsyncpa [#allocation3], 1 }
  0xe1   :  { %107 = vsyncpa [#allocation5], 1 }

</bundles_post_ra>
